<compile_context>
chip_gen: v5e
topology: v5e:2x2
jax: 0.10.0
libtpu: 0.0.40
codegen_flags: <defaults>
</compile_context>

<pallas_src>
import math

import jax
import jax.numpy as jnp
from jax.experimental import pallas as pl
from jax.experimental.pallas import tpu as pltpu


def _round_up(n, m):
    return ((n + m - 1) // m) * m


def _cdiv(a, b):
    return -(-a // b)


def _mlp_kernel(x_ref, w1_ref, b1_ref, w2_ref, b2_ref, w3_ref, b3_ref, o_ref):
    # Cast x to bf16 on the VPU (hidden under the input DMA); MXU matmuls use
    # bf16 inputs with f32 accumulation, bias + ReLU run on the VPU.
    x = x_ref[...].astype(jnp.bfloat16)
    h1 = jnp.dot(x, w1_ref[...], preferred_element_type=jnp.float32)
    h1 = jnp.maximum(h1 + b1_ref[...], 0.0)
    h2 = jnp.dot(h1.astype(jnp.bfloat16), w2_ref[...],
                 preferred_element_type=jnp.float32)
    h2 = jnp.maximum(h2 + b2_ref[...], 0.0)
    # Final layer: narrow-N matmul straight into the (tb, out_dim) output block.
    out = jnp.dot(h2.astype(jnp.bfloat16), w3_ref[...],
                  preferred_element_type=jnp.float32)
    o_ref[...] = (out + b3_ref[...]).astype(o_ref.dtype)


def prepare_mlp_params(params):
    """One-time prep: pad hidden dim to 128 lanes, cast weights to bf16.

    Padded weight rows/cols and bias entries are 0, so padded lanes stay exactly
    zero through the ReLUs and never leak into later layers. Call this ONCE and
    reuse the result across forward calls.
    """
    w1, b1, w2, b2, w3, b3 = params
    in_dim, hidden_dim = w1.shape
    out_dim = w3.shape[1]
    h_pad = _round_up(hidden_dim, 128)

    w1_p = jnp.zeros((in_dim, h_pad), jnp.bfloat16).at[:, :hidden_dim].set(
        w1.astype(jnp.bfloat16))
    w2_p = jnp.zeros((h_pad, h_pad), jnp.bfloat16).at[:hidden_dim, :hidden_dim].set(
        w2.astype(jnp.bfloat16))
    w3_p = jnp.zeros((h_pad, out_dim), jnp.bfloat16).at[:hidden_dim, :].set(
        w3.astype(jnp.bfloat16))
    b1_p = jnp.zeros((1, h_pad), jnp.float32).at[:, :hidden_dim].set(b1)
    b2_p = jnp.zeros((1, h_pad), jnp.float32).at[:, :hidden_dim].set(b2)
    b3_p = b3.astype(jnp.float32).reshape(1, out_dim)
    return (w1_p, b1_p, w2_p, b2_p, w3_p, b3_p)


def _choose_batch_tile(B, block_b):
    """Pick the batch tile: minimize padding, keep >=2 (ideally 4) grid steps
    for v7x's two TensorCores when the batch is large enough."""
    n_steps = max(1, _cdiv(B, block_b))
    if n_steps < 4 and B >= 4 * 256:
        n_steps = 4
    elif n_steps < 2 and B >= 2 * 256:
        n_steps = 2
    return _round_up(_cdiv(B, n_steps), 8)


def mlp_forward(x, prepared_params, *, block_b=1024):
    """Fused 3-layer MLP forward. x: (B, in_dim) f32 -> (B, out_dim) f32."""
    w1_p, b1_p, w2_p, b2_p, w3_p, b3_p = prepared_params
    B, in_dim = x.shape
    h_pad = w1_p.shape[1]
    out_dim = w3_p.shape[1]

    tb = _choose_batch_tile(B, block_b)
    B_pad = _round_up(B, tb)
    x_p = x
    if B_pad != B:
        # Pad batch rows (zero rows produce bias-propagated garbage that is
        # sliced off below). Only done when actually needed.
        x_p = jnp.zeros((B_pad, in_dim), x.dtype).at[:B].set(x)

    grid = (B_pad // tb,)

    # Weights/biases: constant index_map -> DMA'd once, VMEM-resident across grid.
    def fixed(a):
        return pl.BlockSpec(a.shape, lambda i: (0, 0))

    param_bytes = sum(int(a.size) * a.dtype.itemsize
                      for a in (w1_p, b1_p, w2_p, b2_p, w3_p, b3_p))
    flops = 2 * B_pad * (in_dim * h_pad + h_pad * h_pad + h_pad * out_dim)
    bytes_accessed = x_p.size * 4 + param_bytes + B_pad * out_dim * 4

    # Estimated VMEM footprint (double-buffered x/out blocks + resident params +
    # f32/bf16 intermediates). Only raise the scoped limit if we approach v5e's
    # 16 MiB default; leave headroom on v7x (64 MiB physical).
    vmem_est = (2 * tb * in_dim * 4
                + 2 * tb * out_dim * 4
                + 2 * param_bytes
                + 6 * tb * h_pad * 4)
    vmem_limit = None
    if vmem_est > 12 * 1024 * 1024:
        vmem_limit = min(2 * vmem_est, 48 * 1024 * 1024)

    compiler_params = pltpu.CompilerParams(
        dimension_semantics=("parallel",),
        vmem_limit_bytes=vmem_limit)

    out = pl.pallas_call(
        _mlp_kernel,
        out_shape=jax.ShapeDtypeStruct((B_pad, out_dim), jnp.float32),
        grid=grid,
        in_specs=[pl.BlockSpec((tb, in_dim), lambda i: (i, 0)),
                  fixed(w1_p), fixed(b1_p),
                  fixed(w2_p), fixed(b2_p),
                  fixed(w3_p), fixed(b3_p)],
        out_specs=pl.BlockSpec((tb, out_dim), lambda i: (i, 0)),
        compiler_params=compiler_params,
        cost_estimate=pl.CostEstimate(
            flops=flops, transcendentals=0, bytes_accessed=bytes_accessed),
    )(x_p, w1_p, b1_p, w2_p, b2_p, w3_p, b3_p)

    if B_pad != B:
        out = out[:B]
    return out


def _xavier_uniform(key, fan_in, fan_out, gain):
    # Matches torch.nn.init.xavier_uniform_: U(-a, a), a = gain*sqrt(6/(fan_in+fan_out))
    a = gain * math.sqrt(6.0 / (fan_in + fan_out))
    # Stored as (fan_in, fan_out) so the kernel computes x @ W (== torch x @ W.T).
    return jax.random.uniform(key, (fan_in, fan_out), jnp.float32, minval=-a, maxval=a)


def init_mlp_params(key, in_dim, out_dim, hidden_dim=64):
    gain = math.sqrt(2.0)  # nn.init.calculate_gain('relu')
    k1, k2, k3 = jax.random.split(key, 3)
    w1 = _xavier_uniform(k1, in_dim, hidden_dim, gain)
    w2 = _xavier_uniform(k2, hidden_dim, hidden_dim, gain)
    w3 = _xavier_uniform(k3, hidden_dim, out_dim, gain)
    b1 = jnp.full((1, hidden_dim), 0.01, jnp.float32)
    b2 = jnp.full((1, hidden_dim), 0.01, jnp.float32)
    b3 = jnp.full((1, out_dim), 0.01, jnp.float32)
    return (w1, b1, w2, b2, w3, b3)


def mlp_reference_f32(x, params):
    w1, b1, w2, b2, w3, b3 = params
    h1 = jnp.maximum(x @ w1 + b1, 0.0)
    h2 = jnp.maximum(h1 @ w2 + b2, 0.0)
    return h2 @ w3 + b3


def mlp_reference_bf16(x, params):
    # Mirrors the kernel numerics: bf16 matmul inputs, f32 accumulation + bias.
    w1, b1, w2, b2, w3, b3 = params
    bf = jnp.bfloat16
    h1 = jnp.dot(x.astype(bf), w1.astype(bf), preferred_element_type=jnp.float32) + b1
    h1 = jnp.maximum(h1, 0.0)
    h2 = jnp.dot(h1.astype(bf), w2.astype(bf), preferred_element_type=jnp.float32) + b2
    h2 = jnp.maximum(h2, 0.0)
    return jnp.dot(h2.astype(bf), w3.astype(bf), preferred_element_type=jnp.float32) + b3


if __name__ == "__main__":
    key = jax.random.PRNGKey(0)
    kx, kp = jax.random.split(key)

    batch, in_dim, hidden_dim, out_dim = 8, 16, 64, 8
    x = jax.random.normal(kx, (batch, in_dim), jnp.float32)
    params = init_mlp_params(kp, in_dim, out_dim, hidden_dim)
    prepared = prepare_mlp_params(params)  # one-time pad + bf16 cast

    out = mlp_forward(x, prepared)
    out = jax.block_until_ready(out)
    assert out.shape == (batch, out_dim)

    # Tight check against a reference with the same bf16-input / f32-accum numerics.
    ref_bf16 = mlp_reference_bf16(x, params)
    assert jnp.allclose(out, ref_bf16, atol=1e-3, rtol=1e-3), "mismatch vs bf16 reference"

    # Loose sanity check against the pure-f32 PyTorch-equivalent reference.
    # TODO(synk): bf16 matmul inputs deviate ~1e-2 rel from the f32 torch MLP; use
    # f32 matmuls if the caller needs bit-closer parity.
    ref_f32 = mlp_reference_f32(x, params)
    assert jnp.allclose(out, ref_f32, atol=3e-2, rtol=3e-2), "mismatch vs f32 reference"

    # Exercise a ragged, multi-tile batch path (padding + >=2 grid steps).
    big_B = 1030
    xb = jax.random.normal(kx, (big_B, in_dim), jnp.float32)
    out_big = jax.block_until_ready(mlp_forward(xb, prepared, block_b=1024))
    assert out_big.shape == (big_B, out_dim)
    assert jnp.allclose(out_big, mlp_reference_bf16(xb, params), atol=1e-3, rtol=1e-3)

    print("KERNEL_OK")
</pallas_src>

<mosaic_0001>
module attributes {stable_mosaic.version = 11 : i64} {
  func.func @_mlp_kernel(%arg0: i32, %arg1: memref<8x16xf32, #tpu.memory_space<vmem>>, %arg2: memref<16x128xbf16, #tpu.memory_space<vmem>>, %arg3: memref<1x128xf32, #tpu.memory_space<vmem>>, %arg4: memref<128x128xbf16, #tpu.memory_space<vmem>>, %arg5: memref<1x128xf32, #tpu.memory_space<vmem>>, %arg6: memref<128x8xbf16, #tpu.memory_space<vmem>>, %arg7: memref<1x8xf32, #tpu.memory_space<vmem>>, %arg8: memref<8x8xf32, #tpu.memory_space<vmem>>) attributes {dimension_semantics = [#tpu.dimension_semantics<parallel>], iteration_bounds = array<i64: 1>, scalar_prefetch = 0 : i64, scratch_operands = 0 : i64, tpu.core_type = #tpu.core_type<tc>, window_params = [{transform_indices = @transform_0, window_bounds = array<i64: 8, 16>}, {pipeline_mode = #tpu.pipeline_mode<synchronous>, transform_indices = @transform_1, window_bounds = array<i64: 16, 128>}, {pipeline_mode = #tpu.pipeline_mode<synchronous>, transform_indices = @transform_2, window_bounds = array<i64: 1, 128>}, {pipeline_mode = #tpu.pipeline_mode<synchronous>, transform_indices = @transform_3, window_bounds = array<i64: 128, 128>}, {pipeline_mode = #tpu.pipeline_mode<synchronous>, transform_indices = @transform_4, window_bounds = array<i64: 1, 128>}, {pipeline_mode = #tpu.pipeline_mode<synchronous>, transform_indices = @transform_5, window_bounds = array<i64: 128, 8>}, {pipeline_mode = #tpu.pipeline_mode<synchronous>, transform_indices = @transform_6, window_bounds = array<i64: 1, 8>}, {transform_indices = @transform_7, window_bounds = array<i64: 8, 8>}]} {
    %c0 = arith.constant 0 : index
    %c0_0 = arith.constant 0 : index
    %0 = vector.load %arg1[%c0, %c0_0] : memref<8x16xf32, #tpu.memory_space<vmem>>, vector<8x16xf32>
    %1 = arith.truncf %0 : vector<8x16xf32> to vector<8x16xbf16>
    %c0_1 = arith.constant 0 : index
    %c0_2 = arith.constant 0 : index
    %2 = vector.load %arg2[%c0_1, %c0_2] : memref<16x128xbf16, #tpu.memory_space<vmem>>, vector<16x128xbf16>
    %cst = arith.constant dense<0.000000e+00> : vector<8x128xf32>
    %3 = tpu.matmul %1, %2, %cst {dimension_numbers = #tpu.dot_dimension_numbers<[1], [0], [0], [1], [0, 0, 1, 1], [], []>} : vector<8x16xbf16>, vector<16x128xbf16>, vector<8x128xf32> -> vector<8x128xf32>
    %c0_3 = arith.constant 0 : index
    %c0_4 = arith.constant 0 : index
    %4 = vector.load %arg3[%c0_3, %c0_4] : memref<1x128xf32, #tpu.memory_space<vmem>>, vector<1x128xf32>
    %5 = vector.broadcast %4 : vector<1x128xf32> to vector<8x128xf32>
    %6 = arith.addf %3, %5 : vector<8x128xf32>
    %cst_5 = arith.constant 0.000000e+00 : f32
    %7 = vector.broadcast %cst_5 : f32 to vector<8x128xf32>
    %8 = arith.maximumf %6, %7 : vector<8x128xf32>
    %9 = arith.truncf %8 : vector<8x128xf32> to vector<8x128xbf16>
    %c0_6 = arith.constant 0 : index
    %c0_7 = arith.constant 0 : index
    %10 = vector.load %arg4[%c0_6, %c0_7] : memref<128x128xbf16, #tpu.memory_space<vmem>>, vector<128x128xbf16>
    %cst_8 = arith.constant dense<0.000000e+00> : vector<8x128xf32>
    %11 = tpu.matmul %9, %10, %cst_8 {dimension_numbers = #tpu.dot_dimension_numbers<[1], [0], [0], [1], [0, 0, 1, 1], [], []>} : vector<8x128xbf16>, vector<128x128xbf16>, vector<8x128xf32> -> vector<8x128xf32>
    %c0_9 = arith.constant 0 : index
    %c0_10 = arith.constant 0 : index
    %12 = vector.load %arg5[%c0_9, %c0_10] : memref<1x128xf32, #tpu.memory_space<vmem>>, vector<1x128xf32>
    %13 = vector.broadcast %12 : vector<1x128xf32> to vector<8x128xf32>
    %14 = arith.addf %11, %13 : vector<8x128xf32>
    %cst_11 = arith.constant 0.000000e+00 : f32
    %15 = vector.broadcast %cst_11 : f32 to vector<8x128xf32>
    %16 = arith.maximumf %14, %15 : vector<8x128xf32>
    %17 = arith.truncf %16 : vector<8x128xf32> to vector<8x128xbf16>
    %c0_12 = arith.constant 0 : index
    %c0_13 = arith.constant 0 : index
    %18 = vector.load %arg6[%c0_12, %c0_13] : memref<128x8xbf16, #tpu.memory_space<vmem>>, vector<128x8xbf16>
    %cst_14 = arith.constant dense<0.000000e+00> : vector<8x8xf32>
    %19 = tpu.matmul %17, %18, %cst_14 {dimension_numbers = #tpu.dot_dimension_numbers<[1], [0], [0], [1], [0, 0, 1, 1], [], []>} : vector<8x128xbf16>, vector<128x8xbf16>, vector<8x8xf32> -> vector<8x8xf32>
    %c0_15 = arith.constant 0 : index
    %c0_16 = arith.constant 0 : index
    %20 = vector.load %arg7[%c0_15, %c0_16] : memref<1x8xf32, #tpu.memory_space<vmem>>, vector<1x8xf32>
    %21 = vector.broadcast %20 : vector<1x8xf32> to vector<8x8xf32>
    %22 = arith.addf %19, %21 : vector<8x8xf32>
    %c0_17 = arith.constant 0 : index
    %c0_18 = arith.constant 0 : index
    %23 = vector.load %arg8[%c0_17, %c0_18] : memref<8x8xf32, #tpu.memory_space<vmem>>, vector<8x8xf32>
    tpu.vector_store %arg8[%c0_17, %c0_18], %22 {strides = array<i32>} : memref<8x8xf32, #tpu.memory_space<vmem>>, vector<8x8xf32>,
    return
  }
  func.func @transform_0(%arg0: i32) -> (i32, i32) {
    %c0_i32 = arith.constant 0 : i32
    %c0_i32_0 = arith.constant 0 : i32
    return %arg0, %c0_i32 : i32, i32
  }
  func.func @transform_1(%arg0: i32) -> (i32, i32) {
    %c0_i32 = arith.constant 0 : i32
    %c0_i32_0 = arith.constant 0 : i32
    %c0_i32_1 = arith.constant 0 : i32
    return %c0_i32, %c0_i32_0 : i32, i32
  }
  func.func @transform_2(%arg0: i32) -> (i32, i32) {
    %c0_i32 = arith.constant 0 : i32
    %c0_i32_0 = arith.constant 0 : i32
    %c0_i32_1 = arith.constant 0 : i32
    return %c0_i32, %c0_i32_0 : i32, i32
  }
  func.func @transform_3(%arg0: i32) -> (i32, i32) {
    %c0_i32 = arith.constant 0 : i32
    %c0_i32_0 = arith.constant 0 : i32
    %c0_i32_1 = arith.constant 0 : i32
    return %c0_i32, %c0_i32_0 : i32, i32
  }
  func.func @transform_4(%arg0: i32) -> (i32, i32) {
    %c0_i32 = arith.constant 0 : i32
    %c0_i32_0 = arith.constant 0 : i32
    %c0_i32_1 = arith.constant 0 : i32
    return %c0_i32, %c0_i32_0 : i32, i32
  }
  func.func @transform_5(%arg0: i32) -> (i32, i32) {
    %c0_i32 = arith.constant 0 : i32
    %c0_i32_0 = arith.constant 0 : i32
    %c0_i32_1 = arith.constant 0 : i32
    return %c0_i32, %c0_i32_0 : i32, i32
  }
  func.func @transform_6(%arg0: i32) -> (i32, i32) {
    %c0_i32 = arith.constant 0 : i32
    %c0_i32_0 = arith.constant 0 : i32
    %c0_i32_1 = arith.constant 0 : i32
    return %c0_i32, %c0_i32_0 : i32, i32
  }
  func.func @transform_7(%arg0: i32) -> (i32, i32) {
    %c0_i32 = arith.constant 0 : i32
    %c0_i32_0 = arith.constant 0 : i32
    return %arg0, %c0_i32 : i32, i32
  }
}

</mosaic_0001>

<bundles_post_ra>
// kernel: tpu_custom_call.1
= control target key start
LH: loop header
LB: loop body
LE: loop exit
PB: predicated region body
PF: predicated region fallthrough
CT: control target
= control target key end

     0   :  { %12 = vsyncpa [#allocation3], 0  ;;  %s558_s0 = inlined_call_operand.hbm [shape: f32[8,16], index: 0, kind: input, shape index: {}]   ;;  %s559_s1 = inlined_call_operand.hbm [shape: bf16[16,128], index: 1, kind: input, shape index: {}]   ;;  %s560_s2 = inlined_call_operand.vmem [shape: f32[1,128], index: 2, kind: input, shape index: {}]   ;;  %s561_s3 = inlined_call_operand.vmem [shape: bf16[128,128], index: 3, kind: input, shape index: {}]   ;;  %s562_s4 = inlined_call_operand.vmem [shape: f32[1,128], index: 4, kind: input, shape index: {}]   ;;  %s563_s5 = inlined_call_operand.vmem [shape: bf16[128,8], index: 5, kind: input, shape index: {}]   ;;  %s564_s6 = inlined_call_operand.vmem [shape: f32[1,8], index: 6, kind: input, shape index: {}]   ;;  %s565_s7 = inlined_call_operand.hbm [shape: f32[8,8], index: 7, kind: output, shape index: {}]  }
   0x1   :  { %13 = vsyncpa [#allocation6], 0 }
   0x2   :  { %14 = vsyncpa [#allocation4], 0  ;;  %s20_s26 = sshll.u32 %s558_s0, 4  ;;  %s447_s27 = smov [#allocation2]   ;;  %s21_s26 = int_to_ptr.hbm [resolvable:$true] %s20_s26 }
   0x3   :  { %s22_s28 = sshll.u32 %s447_s27, 4  ;;  %s30_s8 = sshll.u32 %s559_s1, 4  ;;  %s23_s28 = int_to_ptr.vmem [resolvable:$true] %s22_s28  ;;  %s31_s8 = int_to_ptr.hbm [resolvable:$true] %s30_s8 }
   0x4   :  { %25 = dma.hbm_to_vmem [thread:$0]  %s21_s26, 128, %s23_s28, [#allocation3]  }
   0x5   :  { %s448_s9 = smov [#allocation5]   ;;  %s449_s11 = smov 64  }
   0x6   :  { %s32_s10 = sshll.u32 %s448_s9, 4  ;;  %s450_s12 = smov 4   ;;  %s33_s10 = int_to_ptr.vmem [resolvable:$true] %s32_s10 }
   0x7   :  { %38 = dma.hbm_to_vmem [thread:$0]  %s31_s8, 128, %s33_s10, [#allocation6], %s449_s11, %s449_s11, %s450_s12  }
   0x8   :  { %441 = dma.done.wait [#allocation3], 128  }
   0x9   :  { %442 = vsyncadd [#allocation3], 4294967168 }
   0xa   :  { %443 = dma.done.wait [#allocation6], 128  }
   0xb   :  { %444 = vsyncadd [#allocation6], 4294967168  ;;  %v344_v0 = vld [vmem:[#allocation5] sm:$0xff]  ;;  %v58_v1 = vld [vmem:[#allocation2] sm:$0xff]  ;;  %vm72_vm0 = vcmask 130048   ;;  %s451_s22 = smov [#allocation7]  }
   0xc   :  { %v352_v2 = vld [vmem:[%s561_s3 + $0x38] sm:$0xff]  ;;  %v59_v3 = vpack.c.bf16 %v58_v1, %v58_v1  ;;  %83 = vmatpush.bf16.msra.mxu0 %v344_v0  ;;  %v351_v4 = vld [vmem:[%s561_s3 + $0x30] sm:$0xff]  ;;  %v350_v5 = vld [vmem:[%s561_s3 + $0x28] sm:$0xff]  ;;  %s262_s23 = sshll.u32 %s451_s22, 4  ;;  %vm255_vm1 = vcmask 64512   ;;  %s263_s23 = int_to_ptr.vmem [resolvable:$true] %s262_s23 }
   0xd   :  { %159 = vmatpush.bf16.msra.mxu1 %v352_v2  ;;  %v349_v6 = vld [vmem:[%s561_s3 + $0x20] sm:$0xff]  ;;  %v348_v7 = vld [vmem:[%s561_s3 + $0x18] sm:$0xff]  ;;  %v347_v8 = vld [vmem:[%s561_s3 + $0x10] sm:$0xff] }
   0xe   :  { %v346_v9 = vld [vmem:[%s561_s3 + $0x8] sm:$0xff]  ;;  %v345_v10 = vld [vmem:[%s561_s3] sm:$0xff]  ;;  %v360_v11 = vld [vmem:[%s563_s5 + $0x38] sm:$0xff] }
   0xf   :  { %279 = vmatmul.msk.bf16.vlgmr.msra.gmra.mxu0 %vm72_vm0, %v59_v3  ;;  %242 = vmatpush.bf16.msra.mxu2 %v360_v11  ;;  %v359_v12 = vld [vmem:[%s563_s5 + $0x30] sm:$0xff]  ;;  %v358_v13 = vld [vmem:[%s563_s5 + $0x28] sm:$0xff]  ;;  %v357_v14 = vld [vmem:[%s563_s5 + $0x20] sm:$0xff] }
  0x10   :  { %v356_v15 = vld [vmem:[%s563_s5 + $0x18] sm:$0xff]  ;;  %v355_v16 = vld [vmem:[%s563_s5 + $0x10] sm:$0xff]  ;;  %v366_v17 = vld [vmem:[%s560_s2] ss:$0 sm:$0xff] }
  0x11   :  { %160 = vmatpush.bf16.msra.mxu1 %v351_v4  ;;  %v354_v23 = vld [vmem:[%s563_s5 + $0x8] sm:$0xff]  ;;  %v353_v24 = vld [vmem:[%s563_s5] sm:$0xff]  ;;  %s264_s5 = sshll.u32 %s565_s7, 4  ;;  %s265_s5 = int_to_ptr.hbm [resolvable:$true] %s264_s5 }
  0x12   :  { %v367_v25 = vld [vmem:[%s562_s4] ss:$0 sm:$0xff] }
  0x13   :  { %243 = vmatpush.bf16.msra.mxu2 %v359_v12  ;;  %v368_v31 = vld [vmem:[%s564_s6] ss:$0 sm:$0xff] }
  0x15   :  { %161 = vmatpush.bf16.msra.mxu1 %v350_v5 }
  0x17   :  { %244 = vmatpush.bf16.msra.mxu2 %v358_v13 }
  0x19   :  { %162 = vmatpush.bf16.msra.mxu1 %v349_v6 }
  0x1b   :  { %245 = vmatpush.bf16.msra.mxu2 %v357_v14 }
  0x1d   :  { %163 = vmatpush.bf16.msra.mxu1 %v348_v7 }
  0x1f   :  { %246 = vmatpush.bf16.msra.mxu2 %v356_v15 }
  0x21   :  { %164 = vmatpush.bf16.msra.mxu1 %v347_v8 }
  0x23   :  { %247 = vmatpush.bf16.msra.mxu2 %v355_v16 }
  0x25   :  { %165 = vmatpush.bf16.msra.mxu1 %v346_v9 }
  0x27   :  { %248 = vmatpush.bf16.msra.mxu2 %v354_v23 }
  0x29   :  { %166 = vmatpush.bf16.msra.mxu1 %v345_v10 }
  0x2b   :  { %249 = vmatpush.bf16.msra.mxu2 %v353_v24 }
  0x8c   :  { %v85_v18 = vpop.f32.mrf.mxu0 }
  0x8d   :  { %v86_v19 = vadd.f32 %v366_v17, %v85_v18 }
  0x8f   :  { %v89_v20 = vmax.f32 %v86_v19, 0.0 }
  0x91   :  { %v90_v21 = vpack.c.bf16 %v89_v20, %v89_v20 }
  0x93   :  { %167 = vmatmul.bf16.vlgmr.msra.gmra.mxu1 %v90_v21 }
  0x94   :  { %v87_v22 = vpop.f32.mrf.mxu0 }
 0x110   :  { %v168_v26 = vpop.f32.mrf.mxu1 }
 0x111   :  { %v169_v27 = vadd.f32 %v367_v25, %v168_v26 }
 0x113   :  { %v172_v28 = vmax.f32 %v169_v27, 0.0 }
 0x115   :  { %v173_v29 = vpack.c.bf16 %v172_v28, %v172_v28 }
 0x117   :  { %250 = vmatmul.bf16.vlgmr.msra.gmra.mxu2 %v173_v29 }
 0x118   :  { %v170_v30 = vpop.f32.mrf.mxu1 }
 0x19a   :  { %v251_v32 = vpop.f32.mrf.mxu2 }
 0x19b   :  { %v252_v33 = vadd.f32 %v368_v31, %v251_v32 }
 0x19d   :  { %256 = vst.msk [vmem:[#allocation7] sm:$0xff] %vm255_vm1, %v252_v33 }
 0x19e   :  { %267 = dma.vmem_to_hbm [thread:$0]  %s263_s23, 128, %s265_s5, [#allocation4]  }
 0x1a2   :  { %v253_v34 = vpop.f32.mrf.mxu2 }
 0x1a3   :  { %445 = dma.done.wait [#allocation4], 128  }
 0x1a4   :  { %446 = vsyncadd [#allocation4], 4294967168 }
 0x1a5   :  { %272 = vsyncpa [#allocation3], 1 }
 0x1a6   :  { %273 = vsyncpa [#allocation6], 1 }
 0x1a7   :  { %274 = vsyncpa [#allocation4], 1 }

</bundles_post_ra>
